<compile_context>
chip_gen: v5e
topology: v5e:2x2
jax: 0.10.0
libtpu: 0.0.40
codegen_flags: <defaults>
</compile_context>

<pallas_src>
import functools

import jax
import jax.numpy as jnp
from jax.experimental import pallas as pl
from jax.experimental.pallas import tpu as pltpu


def _round_up(x, m):
    return ((x + m - 1) // m) * m


def _vmem_capacity_bytes():
    """Physical VMEM per TensorCore; conservative fallback if the query fails."""
    try:
        cap = int(getattr(pltpu.get_tpu_info(), "vmem_capacity_bytes", 0))
        if cap > 0:
            return cap
    except Exception:
        pass
    return 64 * 1024 * 1024  # v7x per-TC size; safe lower bound for v5e/v6e


def _choose_tile_m(M, K, E_pad, budget_bytes, tm_cap=2048):
    """Largest TM (multiple of 16, bf16 sublane packing) whose pipeline working set
    fits budget_bytes, then shrunk so the grid has >= 2 steps (>= 4 when that does
    not cost MXU utilization)."""
    lhs_b, w_b, out_b, bias_b = 2, 2, 4, 4  # bf16 patches/weight, f32 out/bias

    def need(t):
        streamed = 2 * t * (K * lhs_b + E_pad * out_b)       # double-buffered in/out tiles
        resident = 2 * (K * E_pad * w_b + E_pad * bias_b)    # weight/bias also get 2 buffers
        return streamed + resident

    tm = max(16, min(tm_cap, _round_up(M, 16)))
    while tm > 16 and need(tm) > budget_bytes:
        tm -= 16
    # >= 2 grid steps: gives v7x's second TensorCore half the rows and the
    # pipeline something to overlap.
    while tm > 16 and pl.cdiv(M, tm) < 2:
        tm -= 16
    # Prefer >= 4 steps for pipeline overlap, but never shrink below 128-row tiles.
    while tm > 128 and pl.cdiv(M, tm) < 4:
        tm -= 16
    return max(tm, 16)


def _patch_embed_kernel(patches_ref, w_ref, b_ref, o_ref):
    # patches_ref: (TM, K)   bf16 streamed patch tile
    # w_ref:       (K,  Ep)  bf16 resident weight (same block every grid step)
    # b_ref:       (1,  Ep)  f32  resident bias
    # o_ref:       (TM, Ep)  f32
    acc = jnp.dot(patches_ref[...], w_ref[...], preferred_element_type=jnp.float32)
    o_ref[...] = (acc + b_ref[...]).astype(o_ref.dtype)


@functools.partial(jax.jit, static_argnames=("patch_size",))
def patch_embedding(x, weight, bias, patch_size):
    """x: (B, C, H, W) NCHW. weight: (E, C, P, P) as in nn.Conv2d. bias: (E,).

    Returns (B, n_patches, E), matching PatchEmbedding.forward.
    """
    B, C, H, W = x.shape
    P = patch_size
    E = weight.shape[0]
    Hp, Wp = H // P, W // P
    n_patches = Hp * Wp
    K = C * P * P
    M = B * n_patches

    # --- patch gather (Conv2d reduction order: c, kh, kw); cast to bf16 so the
    #     materialized transpose is half-size and the GEMM uses the bf16 MXU path.
    # TODO(synk): fold this gather into the kernel to drop the extra HBM pass.
    patches = x.astype(jnp.bfloat16)
    patches = patches.reshape(B, C, Hp, P, Wp, P)
    patches = patches.transpose(0, 2, 4, 1, 3, 5)          # (B, Hp, Wp, C, P, P)
    patches = patches.reshape(M, K)

    # Weight/bias: pad only E (lane-dense output, full-width MXU tiles). K stays
    # un-padded; the kernel block spans the full K dim so no host pad/copy needed.
    E_pad = _round_up(E, 256)
    w_p = jnp.pad(weight.reshape(E, K).T, ((0, 0), (0, E_pad - E))).astype(jnp.bfloat16)
    b_p = jnp.pad(bias.astype(jnp.float32), (0, E_pad - E)).reshape(1, E_pad)

    cap = _vmem_capacity_bytes()
    vmem_limit = min((cap * 3) // 4, 100 * 1024 * 1024)
    budget = vmem_limit - 4 * 1024 * 1024
    # TODO(synk): if 2*K*E_pad (resident weight) alone exceeds the budget, add an
    # E grid axis and tile the weight along N instead of keeping it resident.
    TM = _choose_tile_m(M, K, E_pad, budget)
    grid_m = pl.cdiv(M, TM)

    cost = pl.CostEstimate(
        flops=2 * M * K * E_pad,
        transcendentals=0,
        bytes_accessed=M * K * 2 + K * E_pad * 2 + M * E_pad * 4 + E_pad * 4,
    )

    out = pl.pallas_call(
        _patch_embed_kernel,
        out_shape=jax.ShapeDtypeStruct((M, E_pad), jnp.float32),
        grid=(grid_m,),
        in_specs=[
            pl.BlockSpec((TM, K), lambda i: (i, 0)),        # streamed patch tile
            pl.BlockSpec((K, E_pad), lambda i: (0, 0)),     # resident weight
            pl.BlockSpec((1, E_pad), lambda i: (0, 0)),     # resident bias
        ],
        out_specs=pl.BlockSpec((TM, E_pad), lambda i: (i, 0)),
        compiler_params=pltpu.CompilerParams(
            dimension_semantics=("parallel",),              # 2-TC split on v7x
            vmem_limit_bytes=vmem_limit,
        ),
        cost_estimate=cost,
    )(patches, w_p, b_p)

    return out[:, :E].astype(x.dtype).reshape(B, n_patches, E)


if __name__ == "__main__":
    # Small config consistent with the module: B=2, C=4, img=16, patch=4, emb=32
    in_channels, patch_size, emb_dim, img_size = 4, 4, 32, 16
    B = 2

    key = jax.random.PRNGKey(0)
    kx, kw, kb = jax.random.split(key, 3)

    x = jax.random.normal(kx, (B, in_channels, img_size, img_size), dtype=jnp.float32)
    # Deterministic synthetic parameters (nn.Conv2d shapes: (E, C, P, P) and (E,))
    fan_in = in_channels * patch_size * patch_size
    bound = 1.0 / (fan_in ** 0.5)
    weight = jax.random.uniform(kw, (emb_dim, in_channels, patch_size, patch_size),
                                minval=-bound, maxval=bound, dtype=jnp.float32)
    bias = jax.random.uniform(kb, (emb_dim,), minval=-bound, maxval=bound,
                              dtype=jnp.float32)

    out = patch_embedding(x, weight, bias, patch_size)
    out = jax.block_until_ready(out)

    # Reference: lax.conv == nn.Conv2d forward (f32). bf16 GEMM inputs -> ~1e-2
    # level tolerance instead of the f32 1e-4.
    ref = jax.lax.conv_general_dilated(
        x, weight, window_strides=(patch_size, patch_size), padding="VALID",
        dimension_numbers=("NCHW", "OIHW", "NCHW"))
    ref = ref + bias.reshape(1, emb_dim, 1, 1)
    ref = ref.reshape(B, emb_dim, -1).transpose(0, 2, 1)

    assert out.shape == (B, (img_size // patch_size) ** 2, emb_dim)
    err = float(jnp.max(jnp.abs(out - ref)))
    assert jnp.allclose(out, ref, atol=5e-2, rtol=5e-2), err

    print("KERNEL_OK")
</pallas_src>

<mosaic_0001>
module attributes {stable_mosaic.version = 11 : i64} {
  func.func @_patch_embed_kernel(%arg0: i32, %arg1: memref<16x64xbf16, #tpu.memory_space<vmem>>, %arg2: memref<64x256xbf16, #tpu.memory_space<vmem>>, %arg3: memref<1x256xf32, #tpu.memory_space<vmem>>, %arg4: memref<16x256xf32, #tpu.memory_space<vmem>>) attributes {dimension_semantics = [#tpu.dimension_semantics<parallel>], iteration_bounds = array<i64: 2>, scalar_prefetch = 0 : i64, scratch_operands = 0 : i64, tpu.core_type = #tpu.core_type<tc>, window_params = [{transform_indices = @transform_0, window_bounds = array<i64: 16, 64>}, {pipeline_mode = #tpu.pipeline_mode<synchronous>, transform_indices = @transform_1, window_bounds = array<i64: 64, 256>}, {pipeline_mode = #tpu.pipeline_mode<synchronous>, transform_indices = @transform_2, window_bounds = array<i64: 1, 256>}, {transform_indices = @transform_3, window_bounds = array<i64: 16, 256>}]} {
    %c0 = arith.constant 0 : index
    %c0_0 = arith.constant 0 : index
    %0 = vector.load %arg1[%c0, %c0_0] : memref<16x64xbf16, #tpu.memory_space<vmem>>, vector<16x64xbf16>
    %c0_1 = arith.constant 0 : index
    %c0_2 = arith.constant 0 : index
    %1 = vector.load %arg2[%c0_1, %c0_2] : memref<64x256xbf16, #tpu.memory_space<vmem>>, vector<64x256xbf16>
    %cst = arith.constant dense<0.000000e+00> : vector<16x256xf32>
    %2 = tpu.matmul %0, %1, %cst {dimension_numbers = #tpu.dot_dimension_numbers<[1], [0], [0], [1], [0, 0, 1, 1], [], []>} : vector<16x64xbf16>, vector<64x256xbf16>, vector<16x256xf32> -> vector<16x256xf32>
    %c0_3 = arith.constant 0 : index
    %c0_4 = arith.constant 0 : index
    %3 = vector.load %arg3[%c0_3, %c0_4] : memref<1x256xf32, #tpu.memory_space<vmem>>, vector<1x256xf32>
    %4 = vector.broadcast %3 : vector<1x256xf32> to vector<16x256xf32>
    %5 = arith.addf %2, %4 : vector<16x256xf32>
    %c0_5 = arith.constant 0 : index
    %c0_6 = arith.constant 0 : index
    %6 = vector.load %arg4[%c0_5, %c0_6] : memref<16x256xf32, #tpu.memory_space<vmem>>, vector<16x256xf32>
    tpu.vector_store %arg4[%c0_5, %c0_6], %5 {strides = array<i32>} : memref<16x256xf32, #tpu.memory_space<vmem>>, vector<16x256xf32>,
    return
  }
  func.func @transform_0(%arg0: i32) -> (i32, i32) {
    %c0_i32 = arith.constant 0 : i32
    %c0_i32_0 = arith.constant 0 : i32
    return %arg0, %c0_i32 : i32, i32
  }
  func.func @transform_1(%arg0: i32) -> (i32, i32) {
    %c0_i32 = arith.constant 0 : i32
    %c0_i32_0 = arith.constant 0 : i32
    %c0_i32_1 = arith.constant 0 : i32
    return %c0_i32, %c0_i32_0 : i32, i32
  }
  func.func @transform_2(%arg0: i32) -> (i32, i32) {
    %c0_i32 = arith.constant 0 : i32
    %c0_i32_0 = arith.constant 0 : i32
    %c0_i32_1 = arith.constant 0 : i32
    return %c0_i32, %c0_i32_0 : i32, i32
  }
  func.func @transform_3(%arg0: i32) -> (i32, i32) {
    %c0_i32 = arith.constant 0 : i32
    %c0_i32_0 = arith.constant 0 : i32
    return %arg0, %c0_i32 : i32, i32
  }
}

</mosaic_0001>

<bundles_post_ra>
// kernel: patch_embedding.1
= control target key start
LH: loop header
LB: loop body
LE: loop exit
PB: predicated region body
PF: predicated region fallthrough
CT: control target
= control target key end

     0   :  { %s428_s12 = smov 0   ;;  %s496_s0 = inlined_call_operand.vmem [shape: bf16[32,64], index: 0, kind: input, shape index: {}]   ;;  %s497_s1 = inlined_call_operand.vmem [shape: bf16[64,256], index: 1, kind: input, shape index: {}]   ;;  %s498_s2 = inlined_call_operand.vmem [shape: f32[1,256], index: 2, kind: input, shape index: {}]   ;;  %s499_s3 = inlined_call_operand.vmem [shape: f32[32,256], index: 3, kind: output, shape index: {}]  }
   0x1 LB: > { %s332_s13 = sadd.s32 4294967295, %s406_s12   ;;  %p336_p0 = scmp.ge.s32.totalorder %s406_s12, 1  ;;  %s406_s12 = sphi %s428_s12, %s13_s12  }
   0x2   : > { %p138_p1 = scmp.lt.s32.totalorder %s406_s12, 3 }
   0x4   : > { %p139_p2 = pnand %p336_p0, %p138_p1 }
   0x5   : > { %s337_s11 = sshll.u32 (!%p139_p2), %s332_s13, 1 }
   0x6   : > { %142 = sbr.rel (%p139_p2) target bundleno = 167 (0xa7), region = 32  ;;  %p164_p3 = scmp.lt.s32.totalorder (!%p139_p2), %s337_s11, 3 }
   0xb   : > { %v372_v0 = vld [vmem:[%s497_s1 + $0x30] sm:$0xf]  ;;  %v391_v1 = vld [vmem:[%s497_s1 + $0x34] sm:$0xf0]  ;;  %v390_v2 = vld [vmem:[%s497_s1 + $0x34] sm:$0xf] }
   0xc   : > { %v373_v3 = vor.u32 %v391_v1, %v372_v0  ;;  %v374_v4 = vld [vmem:[%s497_s1 + $0x38] sm:$0xf0]  ;;  %v364_v5 = vld [vmem:[%s497_s1 + $0x20] sm:$0xf]  ;;  %v389_v6 = vld [vmem:[%s497_s1 + $0x24] sm:$0xf0] }
   0xd   : > { %v377_v7 = vor.u32 %v390_v2, %v374_v4  ;;  %v388_v8 = vld [vmem:[%s497_s1 + $0x24] sm:$0xf]  ;;  %v366_v9 = vld [vmem:[%s497_s1 + $0x28] sm:$0xf0]  ;;  %v365_v10 = vor.u32 %v389_v6, %v364_v5  ;;  %v356_v12 = vld [vmem:[%s497_s1 + $0x10] sm:$0xf] }
   0xe   : > { %246 = vmatpush.bf16.msra.mxu0 %v373_v3  ;;  %v369_v11 = vor.u32 %v388_v8, %v366_v9  ;;  %v387_v13 = vld [vmem:[%s497_s1 + $0x14] sm:$0xf0]  ;;  %v386_v14 = vld [vmem:[%s497_s1 + $0x14] sm:$0xf]  ;;  %v358_v15 = vld [vmem:[%s497_s1 + $0x18] sm:$0xf0] }
   0xf   : > { %260 = vmatpush.bf16.msra.mxu1 %v377_v7  ;;  %v357_v16 = vor.u32 %v387_v13, %v356_v12  ;;  %v361_v17 = vor.u32 %v386_v14, %v358_v15  ;;  %v348_v18 = vld [vmem:[%s497_s1] sm:$0xf]  ;;  %v385_v19 = vld [vmem:[%s497_s1 + $0x4] sm:$0xf0]  ;;  %s501_s11 = smov (!%p164_p3, %s337_s11), 3  ;;  %vm238_vm0 = vcmask 523264  }
  0x10   : > { %v384_v20 = vld [vmem:[%s497_s1 + $0x4] sm:$0xf]  ;;  %v350_v21 = vld [vmem:[%s497_s1 + $0x8] sm:$0xf0]  ;;  %s338_s21 = sshll.u32 %s501_s11, 2  ;;  %v349_v22 = vor.u32 %v385_v19, %v348_v18  ;;  %s382_s27 = sshll.u32 %s501_s11, 4 }
  0x11   : > { %s167_s24 = scalar_lea.vmem %s496_s0, %s338_s21  ;;  %v353_v23 = vor.u32 %v384_v20, %v350_v21  ;;  %v187_v25 = vld [vmem:[%s498_s2] sm:$0x3]  ;;  %s174_s30 = scalar_lea.vmem %s499_s3, %s382_s27 }
  0x12   : > { %247 = vmatpush.bf16.msra.mxu0 %v365_v10  ;;  %v383_v24 = vld [vmem:[%s167_s24] sm:$0xff]  ;;  %v189_v26 = vperm.slane %v187_v25, 0  ;;  %v190_v27 = vperm.slane %v187_v25, 1 }
  0x13   : > { %261 = vmatpush.bf16.msra.mxu1 %v369_v11 }
  0x16   : > { %248 = vmatpush.bf16.msra.mxu0 %v357_v16 }
  0x17   : > { %262 = vmatpush.bf16.msra.mxu1 %v361_v17 }
  0x1a   : > { %249 = vmatpush.bf16.msra.mxu0 %v349_v22 }
  0x1b   : > { %263 = vmatpush.bf16.msra.mxu1 %v353_v23 }
  0x1d   : > { %378 = vmatmul.msk.bf16.vlgmr.msra.gmra.mxu0 %vm238_vm0, %v383_v24 }
  0x1e   : > { %379 = vmatmul.msk.bf16.vlgmr.msra.gmra.mxu1 %vm238_vm0, %v383_v24 }
  0x9a   : > { %v251_v28 = vpop.f32.mrf.mxu0 }
  0x9b   : > { %v252_v29 = vadd.f32 %v251_v28, %v189_v26  ;;  %v265_v30 = vpop.f32.mrf.mxu1 }
  0x9c   : > { %v266_v31 = vadd.f32 %v265_v30, %v190_v27 }
  0x9d   : > { %270 = vst [vmem:[%s174_s30] sm:$0xff] %v252_v29 }
  0x9e   : > { %271 = vst [vmem:[%s174_s30 + $0x8] sm:$0xff] %v266_v31 }
  0xa2   : > { %v253_v32 = vpop.f32.mrf.mxu0 }
  0xa3   : > { %v254_v33 = vadd.f32 %v253_v32, %v189_v26  ;;  %v267_v34 = vpop.f32.mrf.mxu1 }
  0xa4   : > { %v268_v35 = vadd.f32 %v267_v34, %v190_v27 }
  0xa5   : > { %272 = vst [vmem:[%s174_s30 + $0x10] sm:$0xff] %v254_v33 }
  0xa6   : > { %273 = vst [vmem:[%s174_s30 + $0x18] sm:$0xff] %v268_v35 }
  0xa7 PF: > { %s13_s12 = sadd.s32 1, %s406_s12  }
  0xa8   : > { %p10_p4 = scmp.ge.s32.totalorder %s13_s12, 4  }
  0xaa   :  { %12 = sbr.rel (!%p10_p4) target bundleno = 1 (0x1), region = 62 }

</bundles_post_ra>
